<compile_context>
chip_gen: v7x
topology: tpu7x:2x2x1
jax: 0.10.0
libtpu: 0.0.40
codegen_flags: <defaults>
</compile_context>

<pallas_src>
import jax
import jax.numpy as jnp
from jax.experimental import pallas as pl
from jax.experimental.pallas import tpu as pltpu


def _round_up(n, m):
    return ((n + m - 1) // m) * m


def _disaster_risk_kernel(
    x_ref,
    w0_ref, b0_ref,      # Linear(input_dim, 64) with BN0 folded in   (bf16 W, f32 b)
    w1_ref, b1_ref,      # Linear(64, 64)        with BN1 folded in   (bf16 W, f32 b)
    w23_ref, b23_ref,    # fused Linear(64, 32) @ Linear(32, 16)      (bf16 W, f32 b)
    w4_ref, b4_ref,      # Linear(16, num_classes)                    (bf16 W, f32 b)
    out_ref,
):
    # MXU operands in bf16 (single-pass matmul), accumulate + elementwise in f32.
    x = x_ref[...].astype(jnp.bfloat16)

    # feature_extractor_0 + BN0 + ReLU (+ Dropout: identity)
    h = jnp.dot(x, w0_ref[...], preferred_element_type=jnp.float32) + b0_ref[...]
    h = jnp.maximum(h, 0.0)

    # feature_extractor_1 + BN1 + ReLU (+ Dropout: identity)
    h = jnp.dot(h.astype(jnp.bfloat16), w1_ref[...],
                preferred_element_type=jnp.float32) + b1_ref[...]
    h = jnp.maximum(h, 0.0)

    # feature_extractor_2 (64->32) fused with classifier_0 (32->16), then ReLU
    h = jnp.dot(h.astype(jnp.bfloat16), w23_ref[...],
                preferred_element_type=jnp.float32) + b23_ref[...]
    h = jnp.maximum(h, 0.0)

    # classifier_1 (16 -> num_classes)
    logits = jnp.dot(h.astype(jnp.bfloat16), w4_ref[...],
                     preferred_element_type=jnp.float32) + b4_ref[...]

    # Softmax along dim=1 (classes), exact normalization in f32.
    m = jnp.max(logits, axis=-1, keepdims=True)
    e = jnp.exp(logits - m)
    denom = jnp.sum(e, axis=-1, keepdims=True)
    out_ref[...] = e / denom


def fold_params(p, *, weight_dtype=jnp.bfloat16):
    """Host-side parameter prep (f32 math): fold BN into Linear 0/1, fuse
    Linear2·Linear3, then cast the matmul weights to bf16 (biases stay f32)."""
    w0 = p["w0"] * p["bn0_scale"]                       # (in, 64) * (1, 64)
    b0 = p["b0"] * p["bn0_scale"] + p["bn0_shift"]
    w1 = p["w1"] * p["bn1_scale"]
    b1 = p["b1"] * p["bn1_scale"] + p["bn1_shift"]
    w23 = p["w2"] @ p["w3"]                             # (64, 16)
    b23 = p["b2"] @ p["w3"] + p["b3"]                   # (1, 16)
    f32 = jnp.float32
    return dict(
        w0=w0.astype(weight_dtype), b0=b0.astype(f32),
        w1=w1.astype(weight_dtype), b1=b1.astype(f32),
        w23=w23.astype(weight_dtype), b23=b23.astype(f32),
        w4=p["w4"].astype(weight_dtype), b4=p["b4"].astype(f32),
    )


def disaster_risk_forward(x, fp, *, tile_b=1024):
    """Fused forward pass. x: [batch, input_dim] float (f32 or bf16); fp from fold_params."""
    batch, input_dim = x.shape
    num_classes = fp["w4"].shape[1]

    # Batch tile: multiple of 8 (sublane granularity), capped at tile_b, and chosen
    # so large batches produce >= ~8 grid steps (keeps both v7x TCs busy and gives
    # the auto-pipeline room to overlap the x DMA with compute).  No host padding:
    # grid = cdiv(batch, tb) and the ragged final block is masked by Pallas.
    target = _round_up(pl.cdiv(batch, 8), 8)
    tb = max(8, min(tile_b, target))
    grid = (pl.cdiv(batch, tb),)

    x_spec = pl.BlockSpec((tb, input_dim), lambda i: (i, 0))
    out_spec = pl.BlockSpec((tb, num_classes), lambda i: (i, 0))

    def resident_spec(arr):
        # Full-extent block, constant index map -> fetched once, stays in VMEM.
        return pl.BlockSpec(arr.shape, lambda i: (0, 0))

    operands = (
        x,
        fp["w0"], fp["b0"],
        fp["w1"], fp["b1"],
        fp["w23"], fp["b23"],
        fp["w4"], fp["b4"],
    )
    in_specs = [x_spec] + [resident_spec(a) for a in operands[1:]]

    return pl.pallas_call(
        _disaster_risk_kernel,
        out_shape=jax.ShapeDtypeStruct((batch, num_classes), jnp.float32),
        grid=grid,
        in_specs=in_specs,
        out_specs=out_spec,
        compiler_params=pltpu.CompilerParams(
            # Batch tiles are independent -> shard grid steps across the 2 TCs on v7x.
            dimension_semantics=("parallel",),
            # Footprint is a few MiB at tb=1024 (x/out tiles + resident weights),
            # comfortably under the scoped limit on every generation incl. v7x.
            vmem_limit_bytes=32 * 1024 * 1024,
        ),
    )(*operands)


def init_params(key, input_dim, num_classes, eps=1e-5):
    """Deterministic synthetic parameters matching DisasterRiskNetwork.__init__."""
    ks = jax.random.split(key, 20)

    def lin(kw, kb, fan_in, fan_out):
        # weight stored transposed relative to torch: [in, out]
        w = jax.random.normal(kw, (fan_in, fan_out), jnp.float32) * 0.1
        b = jax.random.normal(kb, (1, fan_out), jnp.float32) * 0.05
        return w, b

    w0, b0 = lin(ks[0], ks[1], input_dim, 64)
    w1, b1 = lin(ks[2], ks[3], 64, 64)
    w2, b2 = lin(ks[4], ks[5], 64, 32)
    w3, b3 = lin(ks[6], ks[7], 32, 16)
    w4, b4 = lin(ks[8], ks[9], 16, num_classes)

    def bn_fold(kg, kb, km, kv, n):
        gamma = 1.0 + 0.1 * jax.random.normal(kg, (1, n), jnp.float32)
        beta = 0.1 * jax.random.normal(kb, (1, n), jnp.float32)
        running_mean = 0.1 * jax.random.normal(km, (1, n), jnp.float32)
        running_var = jnp.abs(1.0 + 0.1 * jax.random.normal(kv, (1, n), jnp.float32))
        scale = gamma / jnp.sqrt(running_var + eps)
        shift = beta - running_mean * scale
        return scale, shift

    bn0_scale, bn0_shift = bn_fold(ks[10], ks[11], ks[12], ks[13], 64)
    bn1_scale, bn1_shift = bn_fold(ks[14], ks[15], ks[16], ks[17], 64)

    return dict(
        w0=w0, b0=b0, bn0_scale=bn0_scale, bn0_shift=bn0_shift,
        w1=w1, b1=b1, bn1_scale=bn1_scale, bn1_shift=bn1_shift,
        w2=w2, b2=b2, w3=w3, b3=b3, w4=w4, b4=b4,
    )


def reference_forward(x, p):
    """Pure-JAX f32 reference matching the unfused PyTorch forward (eval mode)."""
    h = x @ p["w0"] + p["b0"]
    h = h * p["bn0_scale"] + p["bn0_shift"]
    h = jnp.maximum(h, 0.0)
    h = h @ p["w1"] + p["b1"]
    h = h * p["bn1_scale"] + p["bn1_shift"]
    h = jnp.maximum(h, 0.0)
    h = h @ p["w2"] + p["b2"]
    h = h @ p["w3"] + p["b3"]
    h = jnp.maximum(h, 0.0)
    logits = h @ p["w4"] + p["b4"]
    return jax.nn.softmax(logits, axis=1)


if __name__ == "__main__":
    key = jax.random.PRNGKey(0)
    k_x, k_x2, k_p = jax.random.split(key, 3)

    input_dim, num_classes = 16, 4
    params = init_params(k_p, input_dim, num_classes)
    fp = fold_params(params)

    # Tolerance is relaxed vs. the pure-f32 version because MXU operands are bf16.
    TOL = 2e-2

    # Small shape check (batch=8, single grid step).
    x_small = jax.random.normal(k_x, (8, input_dim), jnp.float32)
    out_small = jax.block_until_ready(disaster_risk_forward(x_small, fp))
    ref_small = reference_forward(x_small, params)
    assert out_small.shape == (8, num_classes)
    assert jnp.allclose(out_small, ref_small, atol=TOL, rtol=TOL)
    assert jnp.allclose(jnp.sum(out_small, axis=1), 1.0, atol=1e-3)

    # Larger, non-tile-multiple batch: exercises the multi-step grid and the
    # masked ragged final block (no host padding, no output slicing).
    x_big = jax.random.normal(k_x2, (2000, input_dim), jnp.float32)
    out_big = jax.block_until_ready(disaster_risk_forward(x_big, fp))
    ref_big = reference_forward(x_big, params)
    assert out_big.shape == (2000, num_classes)
    assert jnp.allclose(out_big, ref_big, atol=TOL, rtol=TOL)
    assert jnp.allclose(jnp.sum(out_big, axis=1), 1.0, atol=1e-3)

    print("KERNEL_OK")
</pallas_src>

<mosaic_0001>
module attributes {stable_mosaic.version = 11 : i64} {
  func.func @_disaster_risk_kernel(%arg0: i32, %arg1: memref<8x16xf32, #tpu.memory_space<vmem>>, %arg2: memref<16x64xbf16, #tpu.memory_space<vmem>>, %arg3: memref<1x64xf32, #tpu.memory_space<vmem>>, %arg4: memref<64x64xbf16, #tpu.memory_space<vmem>>, %arg5: memref<1x64xf32, #tpu.memory_space<vmem>>, %arg6: memref<64x16xbf16, #tpu.memory_space<vmem>>, %arg7: memref<1x16xf32, #tpu.memory_space<vmem>>, %arg8: memref<16x4xbf16, #tpu.memory_space<vmem>>, %arg9: memref<1x4xf32, #tpu.memory_space<vmem>>, %arg10: memref<8x4xf32, #tpu.memory_space<vmem>>) attributes {dimension_semantics = [#tpu.dimension_semantics<parallel>], iteration_bounds = array<i64: 1>, scalar_prefetch = 0 : i64, scratch_operands = 0 : i64, tpu.core_type = #tpu.core_type<tc>, window_params = [{transform_indices = @transform_0, window_bounds = array<i64: 8, 16>}, {pipeline_mode = #tpu.pipeline_mode<synchronous>, transform_indices = @transform_1, window_bounds = array<i64: 16, 64>}, {pipeline_mode = #tpu.pipeline_mode<synchronous>, transform_indices = @transform_2, window_bounds = array<i64: 1, 64>}, {pipeline_mode = #tpu.pipeline_mode<synchronous>, transform_indices = @transform_3, window_bounds = array<i64: 64, 64>}, {pipeline_mode = #tpu.pipeline_mode<synchronous>, transform_indices = @transform_4, window_bounds = array<i64: 1, 64>}, {pipeline_mode = #tpu.pipeline_mode<synchronous>, transform_indices = @transform_5, window_bounds = array<i64: 64, 16>}, {pipeline_mode = #tpu.pipeline_mode<synchronous>, transform_indices = @transform_6, window_bounds = array<i64: 1, 16>}, {pipeline_mode = #tpu.pipeline_mode<synchronous>, transform_indices = @transform_7, window_bounds = array<i64: 16, 4>}, {pipeline_mode = #tpu.pipeline_mode<synchronous>, transform_indices = @transform_8, window_bounds = array<i64: 1, 4>}, {transform_indices = @transform_9, window_bounds = array<i64: 8, 4>}]} {
    %c0 = arith.constant 0 : index
    %c0_0 = arith.constant 0 : index
    %0 = vector.load %arg1[%c0, %c0_0] : memref<8x16xf32, #tpu.memory_space<vmem>>, vector<8x16xf32>
    %1 = arith.truncf %0 : vector<8x16xf32> to vector<8x16xbf16>
    %c0_1 = arith.constant 0 : index
    %c0_2 = arith.constant 0 : index
    %2 = vector.load %arg2[%c0_1, %c0_2] : memref<16x64xbf16, #tpu.memory_space<vmem>>, vector<16x64xbf16>
    %cst = arith.constant dense<0.000000e+00> : vector<8x64xf32>
    %3 = tpu.matmul %1, %2, %cst {dimension_numbers = #tpu.dot_dimension_numbers<[1], [0], [0], [1], [0, 0, 1, 1], [], []>} : vector<8x16xbf16>, vector<16x64xbf16>, vector<8x64xf32> -> vector<8x64xf32>
    %c0_3 = arith.constant 0 : index
    %c0_4 = arith.constant 0 : index
    %4 = vector.load %arg3[%c0_3, %c0_4] : memref<1x64xf32, #tpu.memory_space<vmem>>, vector<1x64xf32>
    %5 = vector.broadcast %4 : vector<1x64xf32> to vector<8x64xf32>
    %6 = arith.addf %3, %5 : vector<8x64xf32>
    %cst_5 = arith.constant 0.000000e+00 : f32
    %7 = vector.broadcast %cst_5 : f32 to vector<8x64xf32>
    %8 = arith.maximumf %6, %7 : vector<8x64xf32>
    %9 = arith.truncf %8 : vector<8x64xf32> to vector<8x64xbf16>
    %c0_6 = arith.constant 0 : index
    %c0_7 = arith.constant 0 : index
    %10 = vector.load %arg4[%c0_6, %c0_7] : memref<64x64xbf16, #tpu.memory_space<vmem>>, vector<64x64xbf16>
    %cst_8 = arith.constant dense<0.000000e+00> : vector<8x64xf32>
    %11 = tpu.matmul %9, %10, %cst_8 {dimension_numbers = #tpu.dot_dimension_numbers<[1], [0], [0], [1], [0, 0, 1, 1], [], []>} : vector<8x64xbf16>, vector<64x64xbf16>, vector<8x64xf32> -> vector<8x64xf32>
    %c0_9 = arith.constant 0 : index
    %c0_10 = arith.constant 0 : index
    %12 = vector.load %arg5[%c0_9, %c0_10] : memref<1x64xf32, #tpu.memory_space<vmem>>, vector<1x64xf32>
    %13 = vector.broadcast %12 : vector<1x64xf32> to vector<8x64xf32>
    %14 = arith.addf %11, %13 : vector<8x64xf32>
    %cst_11 = arith.constant 0.000000e+00 : f32
    %15 = vector.broadcast %cst_11 : f32 to vector<8x64xf32>
    %16 = arith.maximumf %14, %15 : vector<8x64xf32>
    %17 = arith.truncf %16 : vector<8x64xf32> to vector<8x64xbf16>
    %c0_12 = arith.constant 0 : index
    %c0_13 = arith.constant 0 : index
    %18 = vector.load %arg6[%c0_12, %c0_13] : memref<64x16xbf16, #tpu.memory_space<vmem>>, vector<64x16xbf16>
    %cst_14 = arith.constant dense<0.000000e+00> : vector<8x16xf32>
    %19 = tpu.matmul %17, %18, %cst_14 {dimension_numbers = #tpu.dot_dimension_numbers<[1], [0], [0], [1], [0, 0, 1, 1], [], []>} : vector<8x64xbf16>, vector<64x16xbf16>, vector<8x16xf32> -> vector<8x16xf32>
    %c0_15 = arith.constant 0 : index
    %c0_16 = arith.constant 0 : index
    %20 = vector.load %arg7[%c0_15, %c0_16] : memref<1x16xf32, #tpu.memory_space<vmem>>, vector<1x16xf32>
    %21 = vector.broadcast %20 : vector<1x16xf32> to vector<8x16xf32>
    %22 = arith.addf %19, %21 : vector<8x16xf32>
    %cst_17 = arith.constant 0.000000e+00 : f32
    %23 = vector.broadcast %cst_17 : f32 to vector<8x16xf32>
    %24 = arith.maximumf %22, %23 : vector<8x16xf32>
    %25 = arith.truncf %24 : vector<8x16xf32> to vector<8x16xbf16>
    %c0_18 = arith.constant 0 : index
    %c0_19 = arith.constant 0 : index
    %26 = vector.load %arg8[%c0_18, %c0_19] : memref<16x4xbf16, #tpu.memory_space<vmem>>, vector<16x4xbf16>
    %cst_20 = arith.constant dense<0.000000e+00> : vector<8x4xf32>
    %27 = tpu.matmul %25, %26, %cst_20 {dimension_numbers = #tpu.dot_dimension_numbers<[1], [0], [0], [1], [0, 0, 1, 1], [], []>} : vector<8x16xbf16>, vector<16x4xbf16>, vector<8x4xf32> -> vector<8x4xf32>
    %c0_21 = arith.constant 0 : index
    %c0_22 = arith.constant 0 : index
    %28 = vector.load %arg9[%c0_21, %c0_22] : memref<1x4xf32, #tpu.memory_space<vmem>>, vector<1x4xf32>
    %29 = vector.broadcast %28 : vector<1x4xf32> to vector<8x4xf32>
    %30 = arith.addf %27, %29 : vector<8x4xf32>
    %cst_23 = arith.constant dense<0xFF800000> : vector<8xf32>
    %31 = vector.multi_reduction <maximumf>, %30, %cst_23 [1] : vector<8x4xf32> to vector<8xf32>
    %32 = vector.shape_cast %31 : vector<8xf32> to vector<8x1xf32>
    %33 = vector.broadcast %32 : vector<8x1xf32> to vector<8x4xf32>
    %34 = arith.subf %30, %33 : vector<8x4xf32>
    %35 = math.exp %34 : vector<8x4xf32>
    %cst_24 = arith.constant dense<0.000000e+00> : vector<8xf32>
    %36 = vector.multi_reduction <add>, %35, %cst_24 [1] : vector<8x4xf32> to vector<8xf32>
    %37 = vector.shape_cast %36 : vector<8xf32> to vector<8x1xf32>
    %38 = vector.broadcast %37 : vector<8x1xf32> to vector<8x4xf32>
    %39 = arith.divf %35, %38 : vector<8x4xf32>
    %c0_25 = arith.constant 0 : index
    %c0_26 = arith.constant 0 : index
    %40 = vector.load %arg10[%c0_25, %c0_26] : memref<8x4xf32, #tpu.memory_space<vmem>>, vector<8x4xf32>
    tpu.vector_store %arg10[%c0_25, %c0_26], %39 {strides = array<i32>} : memref<8x4xf32, #tpu.memory_space<vmem>>, vector<8x4xf32>,
    return
  }
  func.func @transform_0(%arg0: i32) -> (i32, i32) {
    %c0_i32 = arith.constant 0 : i32
    %c0_i32_0 = arith.constant 0 : i32
    return %arg0, %c0_i32 : i32, i32
  }
  func.func @transform_1(%arg0: i32) -> (i32, i32) {
    %c0_i32 = arith.constant 0 : i32
    %c0_i32_0 = arith.constant 0 : i32
    %c0_i32_1 = arith.constant 0 : i32
    return %c0_i32, %c0_i32_0 : i32, i32
  }
  func.func @transform_2(%arg0: i32) -> (i32, i32) {
    %c0_i32 = arith.constant 0 : i32
    %c0_i32_0 = arith.constant 0 : i32
    %c0_i32_1 = arith.constant 0 : i32
    return %c0_i32, %c0_i32_0 : i32, i32
  }
  func.func @transform_3(%arg0: i32) -> (i32, i32) {
    %c0_i32 = arith.constant 0 : i32
    %c0_i32_0 = arith.constant 0 : i32
    %c0_i32_1 = arith.constant 0 : i32
    return %c0_i32, %c0_i32_0 : i32, i32
  }
  func.func @transform_4(%arg0: i32) -> (i32, i32) {
    %c0_i32 = arith.constant 0 : i32
    %c0_i32_0 = arith.constant 0 : i32
    %c0_i32_1 = arith.constant 0 : i32
    return %c0_i32, %c0_i32_0 : i32, i32
  }
  func.func @transform_5(%arg0: i32) -> (i32, i32) {
    %c0_i32 = arith.constant 0 : i32
    %c0_i32_0 = arith.constant 0 : i32
    %c0_i32_1 = arith.constant 0 : i32
    return %c0_i32, %c0_i32_0 : i32, i32
  }
  func.func @transform_6(%arg0: i32) -> (i32, i32) {
    %c0_i32 = arith.constant 0 : i32
    %c0_i32_0 = arith.constant 0 : i32
    %c0_i32_1 = arith.constant 0 : i32
    return %c0_i32, %c0_i32_0 : i32, i32
  }
  func.func @transform_7(%arg0: i32) -> (i32, i32) {
    %c0_i32 = arith.constant 0 : i32
    %c0_i32_0 = arith.constant 0 : i32
    %c0_i32_1 = arith.constant 0 : i32
    return %c0_i32, %c0_i32_0 : i32, i32
  }
  func.func @transform_8(%arg0: i32) -> (i32, i32) {
    %c0_i32 = arith.constant 0 : i32
    %c0_i32_0 = arith.constant 0 : i32
    %c0_i32_1 = arith.constant 0 : i32
    return %c0_i32, %c0_i32_0 : i32, i32
  }
  func.func @transform_9(%arg0: i32) -> (i32, i32) {
    %c0_i32 = arith.constant 0 : i32
    %c0_i32_0 = arith.constant 0 : i32
    return %arg0, %c0_i32 : i32, i32
  }
}

</mosaic_0001>

<bundles_post_ra>
// kernel: tpu_custom_call.1
= control target key start
LH: loop header
LB: loop body
LE: loop exit
PB: predicated region body
PF: predicated region fallthrough
CT: control target
= control target key end

     0   :  { %v424_v0 = vmov 0.0   ;;  %vm425_vm0 = vmmov 0   ;;  %vm50_vm1 = vcmask 130048   ;;  %vm135_vm2 = vcmask 523264   ;;  %s535_s1 = inlined_call_operand.vmem [shape: bf16[16,64], index: 1, kind: input, shape index: {}]   ;;  %s536_s0 = inlined_call_operand.vmem [shape: f32[8,16], index: 0, kind: input, shape index: {}]   ;;  %s537_s3 = inlined_call_operand.vmem [shape: bf16[64,64], index: 3, kind: input, shape index: {}]   ;;  %s538_s5 = inlined_call_operand.vmem [shape: bf16[64,16], index: 5, kind: input, shape index: {}]   ;;  %s539_s2 = inlined_call_operand.vmem [shape: f32[1,64], index: 2, kind: input, shape index: {}]   ;;  %s540_s7 = inlined_call_operand.vmem [shape: bf16[16,4], index: 7, kind: input, shape index: {}]   ;;  %s541_s4 = inlined_call_operand.vmem [shape: f32[1,64], index: 4, kind: input, shape index: {}]   ;;  %s542_s6 = inlined_call_operand.vmem [shape: f32[1,16], index: 6, kind: input, shape index: {}]   ;;  %s543_s8 = inlined_call_operand.vmem [shape: f32[1,4], index: 8, kind: input, shape index: {}]   ;;  %s544_s9 = inlined_call_operand.vmem [shape: f32[8,4], index: 9, kind: output, shape index: {}]  }
   0x1   :  { %372 = vmatprep.subr.bf16.mxu0 %v424_v0  ;;  %v410_v1 = vld [vmem:[%s535_s1] sm:$0xff]   ;;  %374 = vmatprep.mubr.msk.bf16.mxu0 %vm425_vm0, %v424_v0  ;;  %v412_v5 = vld [vmem:[%s537_s3 + $0x8] sm:$0xff]   ;;  %v413_v6 = vld [vmem:[%s537_s3 + $0x10] sm:$0xff]   ;;  %vm323_vm3 = vcmask 31744  }
   0x2   :  { %v33_v2 = vld [vmem:[%s536_s0] sm:$0xff]  ;;  %378 = vmatprep.subr.bf16.mxu1 %v424_v0  ;;  %386 = vmatprep.mubr.msk.bf16.mxu1 %vm425_vm0, %v424_v0  ;;  %v414_v7 = vld [vmem:[%s537_s3 + $0x18] sm:$0xff]   ;;  %v416_v9 = vld [vmem:[%s538_s5 + $0x8] sm:$0xff]  }
   0x3   :  { %373 = vmatpush3.bf16.msra.mxu0 %v410_v1  ;;  %v34_v3 = vpack.c.bf16 %v33_v2, %v33_v2  ;;  %v411_v4 = vld [vmem:[%s537_s3] sm:$0xff]   ;;  %v417_v18 = vld [vmem:[%s538_s5 + $0x10] sm:$0xff]   ;;  %v418_v19 = vld [vmem:[%s538_s5 + $0x18] sm:$0xff]  }
   0x4   :  { %390 = vmatprep.subr.bf16.mxu0 %v424_v0  ;;  %379 = vmatpush3.bf16.msra.mxu1 %v411_v4  ;;  %v415_v8 = vld [vmem:[%s538_s5] sm:$0xff]  }
   0x5   :  { %380 = vmatprep.subr.bf16.mxu1 %v424_v0  ;;  %v340_v10 = vld [vmem:[%s539_s2] ss:$0 sm:$0xff] }
   0x6   :  { %375 = vmatmul.mubr.msk.bf16.vlgmr.msra.gmra.mrb[0].mxu0 %vm50_vm1, %v34_v3  ;;  %v419_v20 = vld [vmem:[%s540_s7] sm:$0xff]  }
   0x7   :  { %398 = vmatprep.mubr.msk.bf16.mxu0 %vm425_vm0, %v424_v0  ;;  %391 = vmatpush3.bf16.msra.mxu0 %v415_v8  ;;  %v343_v21 = vld [vmem:[%s541_s4] ss:$0 sm:$0xff] }
   0x8   :  { %381 = vmatpush3.bf16.msra.mxu1 %v412_v5  ;;  %392 = vmatprep.subr.bf16.mxu0 %v424_v0  ;;  %v349_v29 = vld [vmem:[%s542_s6] ss:$0 sm:$0xff] }
   0x9   :  { %382 = vmatprep.subr.bf16.mxu1 %v424_v0  ;;  %v355_v37 = vld [vmem:[%s543_s8] ss:$0 sm:$0xff] }
   0xb   :  { %393 = vmatpush3.bf16.msra.mxu0 %v416_v9 }
   0xc   :  { %383 = vmatpush3.bf16.msra.mxu1 %v413_v6  ;;  %394 = vmatprep.subr.bf16.mxu0 %v424_v0 }
   0xd   :  { %384 = vmatprep.subr.bf16.mxu1 %v424_v0 }
   0xf   :  { %395 = vmatpush3.bf16.msra.mxu0 %v417_v18 }
  0x10   :  { %385 = vmatpush3.bf16.msra.mxu1 %v414_v7  ;;  %396 = vmatprep.subr.bf16.mxu0 %v424_v0 }
  0x11   :  { %402 = vmatprep.subr.bf16.mxu1 %v424_v0 }
  0x13   :  { %397 = vmatpush3.bf16.msra.mxu0 %v418_v19 }
  0xd9   :  { %v88_v11 = vpop.f32.mrb[0].mxu0 }
  0xda   :  { %v89_v12 = vadd.f32 %v340_v10, %v88_v11  ;;  %v376_v13 = vpop.f32.mrb[1].mxu0 }
  0xdb   :  { %v91_v14 = vpop.f32.mrb[2].mxu0 }
  0xdc   :  { %v94_v15 = vmax.f32 %v89_v12, 0.0  ;;  %v377_v16 = vpop.f32.mrb[3].mxu0 }
  0xde   :  { %v95_v17 = vpack.c.bf16 %v94_v15, %v94_v15 }
  0xe0   :  { %387 = vmatmul.mubr.msk.bf16.vlgmr.msra.gmra.mrb[0].mxu1 %vm135_vm2, %v95_v17 }
  0xe1   :  { %404 = vmatprep.mubr.msk.bf16.mxu1 %vm425_vm0, %v424_v0  ;;  %403 = vmatpush3.bf16.msra.mxu1 %v419_v20 }
 0x1b3   :  { %v173_v22 = vpop.f32.mrb[0].mxu1 }
 0x1b4   :  { %v174_v23 = vadd.f32 %v343_v21, %v173_v22  ;;  %v388_v24 = vpop.f32.mrb[1].mxu1 }
 0x1b5   :  { %v176_v25 = vpop.f32.mrb[2].mxu1 }
 0x1b6   :  { %v179_v26 = vmax.f32 %v174_v23, 0.0  ;;  %v389_v27 = vpop.f32.mrb[3].mxu1 }
 0x1b8   :  { %v180_v28 = vpack.c.bf16 %v179_v26, %v179_v26 }
 0x1ba   :  { %399 = vmatmul.mubr.msk.bf16.vlgmr.msra.gmra.mrb[4].mxu0 %vm135_vm2, %v180_v28 }
 0x28d   :  { %v257_v30 = vpop.f32.mrb[4].mxu0 }
 0x28e   :  { %v258_v31 = vadd.f32 %v349_v29, %v257_v30  ;;  %v400_v32 = vpop.f32.mrb[5].mxu0 }
 0x28f   :  { %v260_v33 = vpop.f32.mrb[6].mxu0 }
 0x290   :  { %v263_v34 = vmax.f32 %v258_v31, 0.0  ;;  %v401_v35 = vpop.f32.mrb[7].mxu0 }
 0x292   :  { %v264_v36 = vpack.c.bf16 %v263_v34, %v263_v34 }
 0x294   :  { %405 = vmatmul.mubr.msk.bf16.vlgmr.msra.gmra.mrb[4].mxu1 %vm50_vm1, %v264_v36 }
 0x367   :  { %v317_v38 = vpop.f32.mrb[4].mxu1 }
 0x368   :  { %v318_v39 = vadd.f32 %v355_v37, %v317_v38  ;;  %v406_v40 = vpop.f32.mrb[5].mxu1 }
 0x369   :  { %v320_v41 = vpop.f32.mrb[6].mxu1 }
 0x36a   :  { %v407_v42 = vpop.f32.mrb[7].mxu1  ;;  %v324_v43 = vsel %vm323_vm3, %v318_v39, -inf }
 0x36b   :  { %325 = vmax.xlane.f32.xlu0 %v324_v43 }
 0x3f8   :  { %v326_v44 = vpop.xlane.xlu0 %325 }
 0x3f9   :  { %v327_v45 = vsub.f32 %v318_v39, %v326_v44 }
 0x3fb   :  { %v328_v46 = vmul.f32 1.442695, %v327_v45 }
 0x3fd   :  { %420 = vpow2.f32 %v328_v46 }
 0x407   :  { %v421_v47 = vpop.eup %420 }
 0x408   :  { %v330_v48 = vsel %vm323_vm3, %v421_v47, 0.0 }
 0x409   :  { %331 = vadd.xlane.f32.xlu0 %v330_v48 }
 0x496   :  { %v332_v49 = vpop.xlane.xlu0 %331 }
 0x497   :  { %422 = vrcp.f32 %v332_v49 }
 0x4a1   :  { %v423_v50 = vpop.eup %422 }
 0x4a2   :  { %v334_v51 = vmul.f32 %v423_v50, %v421_v47 }
 0x4a4   :  { %335 = vst.msk [vmem:[%s544_s9] sm:$0xff] %vm323_vm3, %v334_v51 }

</bundles_post_ra>
